<compile_context>
chip_gen: v5e
topology: v5e:2x2
jax: 0.10.0
libtpu: 0.0.40
codegen_flags: <defaults>
</compile_context>

<pallas_src>
import jax
import jax.numpy as jnp
from jax.experimental import pallas as pl
from jax.experimental.pallas import tpu as pltpu


def _round_up(x, m):
    return (x + m - 1) // m * m


def decoder_seq_kernel(tok_ref, emb_ref, h0_ref, wi_ref, wh_ref, b_ref,
                       wout_ref, logp_ref, hout_ref, h_scr):
    t = pl.program_id(0)
    HP = h_scr.shape[-1]          # padded hidden width (multiple of 128)
    G = 3 * HP                    # padded stacked-gate width

    # Initialize the resident hidden-state carry from the HBM h0 once.
    @pl.when(t == 0)
    def _():
        h_scr[...] = h0_ref[...]

    # embedded = relu(embedding(token))          -> (1, HP)
    x = jnp.maximum(emb_ref[0], 0.0)
    h = h_scr[...]                                # (1, HP)

    # Packed biases: [b_ih (G) | b_hh (G) | b_out (VP)], all 128-aligned.
    b_ih = b_ref[:, 0:G]
    b_hh = b_ref[:, G:2 * G]
    b_out = b_ref[:, 2 * G:]

    # Two fused gate matmuls instead of six tiny ones.
    gi = jnp.dot(x, wi_ref[...], preferred_element_type=jnp.float32) + b_ih
    gh = jnp.dot(h, wh_ref[...], preferred_element_type=jnp.float32) + b_hh

    # PyTorch GRU: r,z = sigmoid; n = tanh(gi_n + r*gh_n); h' = (1-z)*n + z*h
    # r and z share one sigmoid over the contiguous (1, 2*HP) lane block.
    rz = jax.nn.sigmoid(gi[:, 0:2 * HP] + gh[:, 0:2 * HP])
    r = rz[:, 0:HP]
    z = rz[:, HP:2 * HP]
    n = jnp.tanh(gi[:, 2 * HP:3 * HP] + r * gh[:, 2 * HP:3 * HP])
    h_new = (1.0 - z) * n + z * h                 # padded lanes stay exactly 0
    h_scr[...] = h_new

    # Output projection + log_softmax.  Padded vocab lanes carry a -1e30 bias
    # so they contribute ~0 to the lse and never win the max.
    logits = jnp.dot(h_new, wout_ref[...],
                     preferred_element_type=jnp.float32) + b_out
    m = jnp.max(logits, axis=1, keepdims=True)
    s = logits - m
    lse = jnp.log(jnp.sum(jnp.exp(s), axis=1, keepdims=True))
    logp_ref[0] = s - lse

    # Resident output block (constant index): cheap one-vreg store each step;
    # HBM writeback happens only once, after the final grid iteration.
    hout_ref[...] = h_new


def decoder_rnn_decode(tokens, hidden, params):
    """Run T decoder steps (teacher forced) in one kernel launch.

    tokens: int32[T]; hidden: (1, 1, H) like PyTorch.
    Returns (log_probs (T, V), new_hidden (1, 1, H)).
    """
    emb = params["embedding"]                 # (V, 1, HP)
    wi, wh = params["w_ih"], params["w_hh"]   # (HP, 3*HP) each
    b_all = params["b_all"]                   # (1, 2*3*HP + VP)
    wout = params["w_out"]                    # (HP, VP)
    H = params["hidden_size"]
    V = params["output_size"]
    HP = emb.shape[-1]
    VP = wout.shape[1]
    G = 3 * HP
    T = tokens.shape[0]

    h0 = jnp.zeros((1, HP), jnp.float32).at[:, :H].set(hidden.reshape(1, H))

    grid_spec = pltpu.PrefetchScalarGridSpec(
        num_scalar_prefetch=1,
        grid=(T,),
        in_specs=[
            pl.BlockSpec((1, 1, HP), lambda t, tok: (tok[t], 0, 0)),   # emb row
            pl.BlockSpec((1, HP), lambda t, tok: (0, 0)),              # h0
            pl.BlockSpec((HP, G), lambda t, tok: (0, 0)),              # Wi_all
            pl.BlockSpec((HP, G), lambda t, tok: (0, 0)),              # Wh_all
            pl.BlockSpec((1, 2 * G + VP), lambda t, tok: (0, 0)),      # biases
            pl.BlockSpec((HP, VP), lambda t, tok: (0, 0)),             # Wout
        ],
        out_specs=[
            pl.BlockSpec((1, 1, VP), lambda t, tok: (t, 0, 0)),        # logp[t]
            pl.BlockSpec((1, HP), lambda t, tok: (0, 0)),              # h_final
        ],
        scratch_shapes=[pltpu.VMEM((1, HP), jnp.float32)],             # h carry
    )

    logp_pad, h_pad = pl.pallas_call(
        decoder_seq_kernel,
        out_shape=(jax.ShapeDtypeStruct((T, 1, VP), jnp.float32),
                   jax.ShapeDtypeStruct((1, HP), jnp.float32)),
        grid_spec=grid_spec,
        compiler_params=pltpu.CompilerParams(
            dimension_semantics=("arbitrary",)),
    )(tokens, emb, h0, wi, wh, b_all, wout)

    return logp_pad[:, 0, :V], h_pad[:, :H].reshape(1, 1, H)


def decoder_rnn_step(token, hidden, params):
    """Single-step API matching the PyTorch forward: token int32[1]."""
    logp, h_new = decoder_rnn_decode(token.reshape(1), hidden, params)
    return logp, h_new


def init_params(key, hidden_size, output_size):
    H, V = hidden_size, output_size
    HP = _round_up(H, 128)
    VP = _round_up(V, 128)
    G = 3 * HP
    k = 1.0 / jnp.sqrt(jnp.float32(H))
    keys = jax.random.split(key, 8)
    emb = jax.random.normal(keys[0], (V, H), jnp.float32)          # nn.Embedding ~ N(0,1)
    w_ih = jax.random.uniform(keys[1], (3 * H, H), jnp.float32, -k, k)
    w_hh = jax.random.uniform(keys[2], (3 * H, H), jnp.float32, -k, k)
    b_ih = jax.random.uniform(keys[3], (3 * H,), jnp.float32, -k, k)
    b_hh = jax.random.uniform(keys[4], (3 * H,), jnp.float32, -k, k)
    w_out = jax.random.uniform(keys[5], (V, H), jnp.float32, -k, k)
    b_out = jax.random.uniform(keys[6], (V,), jnp.float32, -k, k)

    # Lane-padded, fused/transposed layouts for the kernel.
    emb_pad = jnp.zeros((V, 1, HP), jnp.float32).at[:, 0, :H].set(emb)

    wi_all = jnp.zeros((HP, G), jnp.float32)
    wh_all = jnp.zeros((HP, G), jnp.float32)
    for g in range(3):                        # gate order [r, z, n]
        wi_all = wi_all.at[:H, g * HP:g * HP + H].set(w_ih[g * H:(g + 1) * H, :].T)
        wh_all = wh_all.at[:H, g * HP:g * HP + H].set(w_hh[g * H:(g + 1) * H, :].T)

    b_all = jnp.zeros((1, 2 * G + VP), jnp.float32)
    for g in range(3):
        b_all = b_all.at[0, g * HP:g * HP + H].set(b_ih[g * H:(g + 1) * H])
        b_all = b_all.at[0, G + g * HP:G + g * HP + H].set(b_hh[g * H:(g + 1) * H])
    b_all = b_all.at[0, 2 * G:].set(-1e30)    # mask padded vocab lanes
    b_all = b_all.at[0, 2 * G:2 * G + V].set(b_out)

    wout_pad = jnp.zeros((HP, VP), jnp.float32).at[:H, :V].set(w_out.T)

    params = {
        "embedding": emb_pad, "w_ih": wi_all, "w_hh": wh_all,
        "b_all": b_all, "w_out": wout_pad,
        "hidden_size": H, "output_size": V,
    }
    raw = {"emb": emb, "w_ih": w_ih, "w_hh": w_hh, "b_ih": b_ih,
           "b_hh": b_hh, "w_out": w_out, "b_out": b_out}
    return params, raw


def reference_decode(tokens, hidden, raw):
    """Pure-JAX replica of looping the PyTorch forward over the tokens."""
    H = hidden.shape[-1]
    h = hidden.reshape(1, H)
    logps = []
    for i in range(tokens.shape[0]):
        x = jnp.maximum(raw["emb"][tokens[i]], 0.0)[None, :]       # (1, H)
        gi = x @ raw["w_ih"].T + raw["b_ih"]                       # (1, 3H)
        gh = h @ raw["w_hh"].T + raw["b_hh"]
        r = jax.nn.sigmoid(gi[:, :H] + gh[:, :H])
        z = jax.nn.sigmoid(gi[:, H:2 * H] + gh[:, H:2 * H])
        n = jnp.tanh(gi[:, 2 * H:] + r * gh[:, 2 * H:])
        h = (1.0 - z) * n + z * h
        logits = h @ raw["w_out"].T + raw["b_out"]
        logps.append(jax.nn.log_softmax(logits, axis=1))
    return jnp.concatenate(logps, axis=0), h.reshape(1, 1, H)


if __name__ == "__main__":
    HIDDEN = 32
    VOCAB = 64
    T = 8

    key = jax.random.PRNGKey(0)
    pkey, hkey, tkey = jax.random.split(key, 3)
    params, raw = init_params(pkey, HIDDEN, VOCAB)

    tokens = jax.random.randint(tkey, (T,), 0, VOCAB, dtype=jnp.int32)
    hidden = 0.1 * jax.random.normal(hkey, (1, 1, HIDDEN), jnp.float32)

    # Multi-step decode (one kernel launch for all T steps).
    logp, h_new = decoder_rnn_decode(tokens, hidden, params)
    jax.block_until_ready((logp, h_new))

    ref_logp, ref_h = reference_decode(tokens, hidden, raw)
    assert logp.shape == (T, VOCAB) and h_new.shape == (1, 1, HIDDEN)
    assert jnp.allclose(logp, ref_logp, atol=2e-5, rtol=2e-5)
    assert jnp.allclose(h_new, ref_h, atol=2e-5, rtol=2e-5)

    # Single-step API (matches the module's forward signature exactly).
    logp1, h1 = decoder_rnn_step(tokens[:1], hidden, params)
    jax.block_until_ready((logp1, h1))
    ref_logp1, ref_h1 = reference_decode(tokens[:1], hidden, raw)
    assert jnp.allclose(logp1, ref_logp1, atol=2e-5, rtol=2e-5)
    assert jnp.allclose(h1, ref_h1, atol=2e-5, rtol=2e-5)

    print("KERNEL_OK")
</pallas_src>

<mosaic_0001>
module attributes {stable_mosaic.version = 11 : i64} {
  func.func @decoder_seq_kernel(%arg0: i32, %arg1: memref<8xi32, #tpu.memory_space<smem>>, %arg2: memref<1x1x128xf32, #tpu.memory_space<vmem>>, %arg3: memref<1x128xf32, #tpu.memory_space<vmem>>, %arg4: memref<128x384xf32, #tpu.memory_space<vmem>>, %arg5: memref<128x384xf32, #tpu.memory_space<vmem>>, %arg6: memref<1x896xf32, #tpu.memory_space<vmem>>, %arg7: memref<128x128xf32, #tpu.memory_space<vmem>>, %arg8: memref<1x1x128xf32, #tpu.memory_space<vmem>>, %arg9: memref<1x128xf32, #tpu.memory_space<vmem>>, %arg10: memref<1x128xf32, #tpu.memory_space<vmem>>) attributes {dimension_semantics = [#tpu.dimension_semantics<arbitrary>], iteration_bounds = array<i64: 8>, scalar_prefetch = 1 : i64, scratch_operands = 1 : i64, tpu.core_type = #tpu.core_type<tc>, window_params = [{transform_indices = @transform_0, window_bounds = array<i64: 1, 1, 128>}, {pipeline_mode = #tpu.pipeline_mode<synchronous>, transform_indices = @transform_1, window_bounds = array<i64: 1, 128>}, {pipeline_mode = #tpu.pipeline_mode<synchronous>, transform_indices = @transform_2, window_bounds = array<i64: 128, 384>}, {pipeline_mode = #tpu.pipeline_mode<synchronous>, transform_indices = @transform_3, window_bounds = array<i64: 128, 384>}, {pipeline_mode = #tpu.pipeline_mode<synchronous>, transform_indices = @transform_4, window_bounds = array<i64: 1, 896>}, {pipeline_mode = #tpu.pipeline_mode<synchronous>, transform_indices = @transform_5, window_bounds = array<i64: 128, 128>}, {transform_indices = @transform_6, window_bounds = array<i64: 1, 1, 128>}, {pipeline_mode = #tpu.pipeline_mode<synchronous>, transform_indices = @transform_7, window_bounds = array<i64: 1, 128>}]} {
    %c0_i32 = arith.constant 0 : i32
    %0 = arith.cmpi eq, %arg0, %c0_i32 : i32
    %1 = arith.extui %0 : i1 to i32
    %c0_i32_0 = arith.constant 0 : i32
    %2 = arith.cmpi ne, %1, %c0_i32_0 : i32
    scf.if %2 {
      %c0_29 = arith.constant 0 : index
      %c0_30 = arith.constant 0 : index
      %55 = vector.load %arg3[%c0_29, %c0_30] : memref<1x128xf32, #tpu.memory_space<vmem>>, vector<1x128xf32>
      %c0_31 = arith.constant 0 : index
      %c0_32 = arith.constant 0 : index
      %56 = vector.load %arg10[%c0_31, %c0_32] : memref<1x128xf32, #tpu.memory_space<vmem>>, vector<1x128xf32>
      tpu.vector_store %arg10[%c0_31, %c0_32], %55 {strides = array<i32>} : memref<1x128xf32, #tpu.memory_space<vmem>>, vector<1x128xf32>,
    } else {
    }
    %c0 = arith.constant 0 : index
    %c0_1 = arith.constant 0 : index
    %c0_2 = arith.constant 0 : index
    %3 = vector.load %arg2[%c0, %c0_1, %c0_2] : memref<1x1x128xf32, #tpu.memory_space<vmem>>, vector<1x1x128xf32>
    %4 = vector.shape_cast %3 : vector<1x1x128xf32> to vector<1x128xf32>
    %cst = arith.constant 0.000000e+00 : f32
    %5 = vector.broadcast %cst : f32 to vector<1x128xf32>
    %6 = arith.maximumf %4, %5 : vector<1x128xf32>
    %c0_3 = arith.constant 0 : index
    %c0_4 = arith.constant 0 : index
    %7 = vector.load %arg10[%c0_3, %c0_4] : memref<1x128xf32, #tpu.memory_space<vmem>>, vector<1x128xf32>
    %c0_5 = arith.constant 0 : index
    %c0_6 = arith.constant 0 : index
    %8 = vector.load %arg6[%c0_5, %c0_6] : memref<1x896xf32, #tpu.memory_space<vmem>>, vector<1x384xf32>
    %c0_7 = arith.constant 0 : index
    %c384 = arith.constant 384 : index
    %9 = vector.load %arg6[%c0_7, %c384] : memref<1x896xf32, #tpu.memory_space<vmem>>, vector<1x384xf32>
    %c0_8 = arith.constant 0 : index
    %c768 = arith.constant 768 : index
    %10 = vector.load %arg6[%c0_8, %c768] : memref<1x896xf32, #tpu.memory_space<vmem>>, vector<1x128xf32>
    %c0_9 = arith.constant 0 : index
    %c0_10 = arith.constant 0 : index
    %11 = vector.load %arg4[%c0_9, %c0_10] : memref<128x384xf32, #tpu.memory_space<vmem>>, vector<128x384xf32>
    %cst_11 = arith.constant dense<0.000000e+00> : vector<1x384xf32>
    %12 = tpu.matmul %6, %11, %cst_11 {dimension_numbers = #tpu.dot_dimension_numbers<[1], [0], [0], [1], [0, 0, 1, 1], [], []>} : vector<1x128xf32>, vector<128x384xf32>, vector<1x384xf32> -> vector<1x384xf32>
    %13 = arith.addf %12, %8 : vector<1x384xf32>
    %c0_12 = arith.constant 0 : index
    %c0_13 = arith.constant 0 : index
    %14 = vector.load %arg5[%c0_12, %c0_13] : memref<128x384xf32, #tpu.memory_space<vmem>>, vector<128x384xf32>
    %cst_14 = arith.constant dense<0.000000e+00> : vector<1x384xf32>
    %15 = tpu.matmul %7, %14, %cst_14 {dimension_numbers = #tpu.dot_dimension_numbers<[1], [0], [0], [1], [0, 0, 1, 1], [], []>} : vector<1x128xf32>, vector<128x384xf32>, vector<1x384xf32> -> vector<1x384xf32>
    %16 = arith.addf %15, %9 : vector<1x384xf32>
    %17 = vector.extract_strided_slice %13 {offsets = [0, 0], sizes = [1, 256], strides = [1, 1]} : vector<1x384xf32> to vector<1x256xf32>
    %18 = vector.extract_strided_slice %16 {offsets = [0, 0], sizes = [1, 256], strides = [1, 1]} : vector<1x384xf32> to vector<1x256xf32>
    %19 = arith.addf %17, %18 : vector<1x256xf32>
    %20 = arith.negf %19 : vector<1x256xf32>
    %21 = math.exp %20 : vector<1x256xf32>
    %cst_15 = arith.constant 1.000000e+00 : f32
    %22 = vector.broadcast %cst_15 : f32 to vector<1x256xf32>
    %23 = arith.addf %22, %21 : vector<1x256xf32>
    %24 = arith.divf %22, %23 : vector<1x256xf32>
    %25 = vector.extract_strided_slice %24 {offsets = [0, 0], sizes = [1, 128], strides = [1, 1]} : vector<1x256xf32> to vector<1x128xf32>
    %26 = vector.extract_strided_slice %24 {offsets = [0, 128], sizes = [1, 128], strides = [1, 1]} : vector<1x256xf32> to vector<1x128xf32>
    %27 = vector.extract_strided_slice %13 {offsets = [0, 256], sizes = [1, 128], strides = [1, 1]} : vector<1x384xf32> to vector<1x128xf32>
    %28 = vector.extract_strided_slice %16 {offsets = [0, 256], sizes = [1, 128], strides = [1, 1]} : vector<1x384xf32> to vector<1x128xf32>
    %29 = arith.mulf %25, %28 : vector<1x128xf32>
    %30 = arith.addf %27, %29 : vector<1x128xf32>
    %31 = math.tanh %30 : vector<1x128xf32>
    %cst_16 = arith.constant 1.000000e+00 : f32
    %32 = vector.broadcast %cst_16 : f32 to vector<1x128xf32>
    %33 = arith.subf %32, %26 : vector<1x128xf32>
    %34 = arith.mulf %33, %31 : vector<1x128xf32>
    %35 = arith.mulf %26, %7 : vector<1x128xf32>
    %36 = arith.addf %34, %35 : vector<1x128xf32>
    %c0_17 = arith.constant 0 : index
    %c0_18 = arith.constant 0 : index
    %37 = vector.load %arg10[%c0_17, %c0_18] : memref<1x128xf32, #tpu.memory_space<vmem>>, vector<1x128xf32>
    tpu.vector_store %arg10[%c0_17, %c0_18], %36 {strides = array<i32>} : memref<1x128xf32, #tpu.memory_space<vmem>>, vector<1x128xf32>,
    %c0_19 = arith.constant 0 : index
    %c0_20 = arith.constant 0 : index
    %38 = vector.load %arg7[%c0_19, %c0_20] : memref<128x128xf32, #tpu.memory_space<vmem>>, vector<128x128xf32>
    %cst_21 = arith.constant dense<0.000000e+00> : vector<1x128xf32>
    %39 = tpu.matmul %36, %38, %cst_21 {dimension_numbers = #tpu.dot_dimension_numbers<[1], [0], [0], [1], [0, 0, 1, 1], [], []>} : vector<1x128xf32>, vector<128x128xf32>, vector<1x128xf32> -> vector<1x128xf32>
    %40 = arith.addf %39, %10 : vector<1x128xf32>
    %cst_22 = arith.constant dense<0xFF800000> : vector<1xf32>
    %41 = vector.multi_reduction <maximumf>, %40, %cst_22 [1] : vector<1x128xf32> to vector<1xf32>
    %42 = vector.shape_cast %41 : vector<1xf32> to vector<1x1xf32>
    %43 = vector.broadcast %42 : vector<1x1xf32> to vector<1x128xf32>
    %44 = arith.subf %40, %43 : vector<1x128xf32>
    %45 = math.exp %44 : vector<1x128xf32>
    %cst_23 = arith.constant dense<0.000000e+00> : vector<1xf32>
    %46 = vector.multi_reduction <add>, %45, %cst_23 [1] : vector<1x128xf32> to vector<1xf32>
    %47 = vector.shape_cast %46 : vector<1xf32> to vector<1x1xf32>
    %48 = math.log %47 : vector<1x1xf32>
    %49 = vector.broadcast %48 : vector<1x1xf32> to vector<1x128xf32>
    %50 = arith.subf %44, %49 : vector<1x128xf32>
    %c0_24 = arith.constant 0 : index
    %c0_25 = arith.constant 0 : index
    %c0_26 = arith.constant 0 : index
    %51 = vector.load %arg8[%c0_24, %c0_25, %c0_26] : memref<1x1x128xf32, #tpu.memory_space<vmem>>, vector<1x1x128xf32>
    %52 = vector.shape_cast %51 : vector<1x1x128xf32> to vector<1x128xf32>
    %53 = vector.shape_cast %50 : vector<1x128xf32> to vector<1x1x128xf32>
    tpu.vector_store %arg8[%c0_24, %c0_25, %c0_26], %53 {strides = array<i32>} : memref<1x1x128xf32, #tpu.memory_space<vmem>>, vector<1x1x128xf32>,
    %c0_27 = arith.constant 0 : index
    %c0_28 = arith.constant 0 : index
    %54 = vector.load %arg9[%c0_27, %c0_28] : memref<1x128xf32, #tpu.memory_space<vmem>>, vector<1x128xf32>
    tpu.vector_store %arg9[%c0_27, %c0_28], %36 {strides = array<i32>} : memref<1x128xf32, #tpu.memory_space<vmem>>, vector<1x128xf32>,
    return
  }
  func.func @transform_0(%arg0: i32, %arg1: memref<8xi32, #tpu.memory_space<smem>>) -> (i32, i32, i32) {
    %0 = arith.index_cast %arg0 : i32 to index
    %1 = memref.load %arg1[%0] : memref<8xi32, #tpu.memory_space<smem>>
    %c0_i32 = arith.constant 0 : i32
    %c0_i32_0 = arith.constant 0 : i32
    %c0_i32_1 = arith.constant 0 : i32
    return %1, %c0_i32, %c0_i32_0 : i32, i32, i32
  }
  func.func @transform_1(%arg0: i32, %arg1: memref<8xi32, #tpu.memory_space<smem>>) -> (i32, i32) {
    %c0_i32 = arith.constant 0 : i32
    %c0_i32_0 = arith.constant 0 : i32
    %c0_i32_1 = arith.constant 0 : i32
    return %c0_i32, %c0_i32_0 : i32, i32
  }
  func.func @transform_2(%arg0: i32, %arg1: memref<8xi32, #tpu.memory_space<smem>>) -> (i32, i32) {
    %c0_i32 = arith.constant 0 : i32
    %c0_i32_0 = arith.constant 0 : i32
    %c0_i32_1 = arith.constant 0 : i32
    return %c0_i32, %c0_i32_0 : i32, i32
  }
  func.func @transform_3(%arg0: i32, %arg1: memref<8xi32, #tpu.memory_space<smem>>) -> (i32, i32) {
    %c0_i32 = arith.constant 0 : i32
    %c0_i32_0 = arith.constant 0 : i32
    %c0_i32_1 = arith.constant 0 : i32
    return %c0_i32, %c0_i32_0 : i32, i32
  }
  func.func @transform_4(%arg0: i32, %arg1: memref<8xi32, #tpu.memory_space<smem>>) -> (i32, i32) {
    %c0_i32 = arith.constant 0 : i32
    %c0_i32_0 = arith.constant 0 : i32
    %c0_i32_1 = arith.constant 0 : i32
    return %c0_i32, %c0_i32_0 : i32, i32
  }
  func.func @transform_5(%arg0: i32, %arg1: memref<8xi32, #tpu.memory_space<smem>>) -> (i32, i32) {
    %c0_i32 = arith.constant 0 : i32
    %c0_i32_0 = arith.constant 0 : i32
    %c0_i32_1 = arith.constant 0 : i32
    return %c0_i32, %c0_i32_0 : i32, i32
  }
  func.func @transform_6(%arg0: i32, %arg1: memref<8xi32, #tpu.memory_space<smem>>) -> (i32, i32, i32) {
    %c0_i32 = arith.constant 0 : i32
    %c0_i32_0 = arith.constant 0 : i32
    %c0_i32_1 = arith.constant 0 : i32
    return %arg0, %c0_i32, %c0_i32_0 : i32, i32, i32
  }
  func.func @transform_7(%arg0: i32, %arg1: memref<8xi32, #tpu.memory_space<smem>>) -> (i32, i32) {
    %c0_i32 = arith.constant 0 : i32
    %c0_i32_0 = arith.constant 0 : i32
    %c0_i32_1 = arith.constant 0 : i32
    return %c0_i32, %c0_i32_0 : i32, i32
  }
}

</mosaic_0001>

<bundles_post_ra>
// kernel: tpu_custom_call.1
= control target key start
LH: loop header
LB: loop body
LE: loop exit
PB: predicated region body
PF: predicated region fallthrough
CT: control target
= control target key end

     0   :  { %s1301_s30 = smov [#allocation4]   ;;  %s1597_s0 = inlined_call_operand.hbm [shape: s32[8], index: 0, kind: input, shape index: {}]   ;;  %s1598_s1 = inlined_call_operand.hbm [shape: f32[64,1,128], index: 1, kind: input, shape index: {}]   ;;  %s1599_s2 = inlined_call_operand.vmem [shape: f32[1,128], index: 2, kind: input, shape index: {}]   ;;  %s1600_s3 = inlined_call_operand.hbm [shape: f32[128,384], index: 3, kind: input, shape index: {}]   ;;  %s1601_s4 = inlined_call_operand.hbm [shape: f32[128,384], index: 4, kind: input, shape index: {}]   ;;  %s1602_s5 = inlined_call_operand.hbm [shape: f32[1,896], index: 5, kind: input, shape index: {}]   ;;  %s1603_s6 = inlined_call_operand.hbm [shape: f32[128,128], index: 6, kind: input, shape index: {}]   ;;  %s1604_s7 = inlined_call_operand.hbm [shape: f32[8,1,128], index: 7, kind: output, shape index: {0}]   ;;  %s1605_s8 = inlined_call_operand.hbm [shape: f32[1,128], index: 8, kind: output, shape index: {1}]  }
   0x1   :  { %1608 = sst [smem:[#allocation28_spill]] %s1600_s3  ;;  %s15_s29 = sshll.u32 %s1597_s0, 4  ;;  %s16_s29 = int_to_ptr.hbm [resolvable:$true] %s15_s29 }
   0x2   :  { %1609 = sst [smem:[#allocation29_spill]] %s1601_s4 }
   0x3   :  { %1610 = sst [smem:[#allocation30_spill]] %s1602_s5 }
   0x4   :  { %1611 = sst [smem:[#allocation31_spill]] %s1603_s6 }
   0x5   :  { %18 = dma.hbm_to_smem %s16_s29, 16, %s1301_s30, [#allocation3] }
   0x6   :  { %1251 = dma.done.wait [#allocation3], 16 }
   0x7   :  { %1252 = vsyncadd [#allocation3], 4294967280 }
   0x8   :  { %21 = sfence }
   0x9   :  { %22 = vsyncpa [#allocation6], 0 }
   0xa   :  { %24 = vsyncpa [#allocation6 + $0x1], 0 }
   0xb   :  { %25 = vsyncpa [#allocation9], 0 }
   0xc   :  { %26 = vsyncpa [#allocation12], 0 }
   0xd   :  { %27 = vsyncpa [#allocation7], 0 }
   0xe   :  { %29 = vsyncpa [#allocation7 + $0x1], 0 }
   0xf   :  { %30 = vsyncpa [#allocation16], 0  ;;  %s1359_s9 = smov 0   ;;  %s1361_s10 = smov 0  }
  0x10   :  { %s1363_s11 = smov 0   ;;  %s1365_s0 = smov 0  }
  0x11   :  { %s1367_s12 = smov 0   ;;  %s1369_s13 = smov 0  }
  0x12   :  { %s1371_s14 = smov 0  }
  0x13 LB: > { %1612 = sst [smem:[#allocation25_spill]] %s1295_s13  ;;  %s1395_s15 = sadd.s32 4294967295, %s1299_s14   ;;  %s1299_s14 = sphi %s1371_s14, %s1637_s14   ;;  %s1295_s13 = sphi %s1369_s13, %s1631_s13   ;;  %s1291_s12 = sphi %s1367_s12, %s1636_s12   ;;  %s1287_s0 = sphi %s1365_s0, %s1635_s0   ;;  %s1283_s11 = sphi %s1363_s11, %s1634_s11   ;;  %s1279_s10 = sphi %s1361_s10, %s1633_s10   ;;  %s1275_s9 = sphi %s1359_s9, %s1632_s9  }
  0x14   : > { %s845_s16 = sadd.s32 4294967294, %s1299_s14   ;;  %p59_p0 = scmp.eq.s32.totalorder %s1395_s15, 0 }
  0x15   : > { %p186_p1 = scmp.ne.s32.totalorder %s1283_s11, %s1279_s10  ;;  %p1606_p2 = scmp.eq.s32.totalorder %s1395_s15, 7 }
  0x16   : > { %p192_p3 = scmp.ne.s32.totalorder %s1279_s10, %s1275_s9  ;;  %p193_p4 = scmp.eq.s32.totalorder %s845_s16, 7 }
  0x17   : > { %p1406_p5 = por %p1606_p2, %p186_p1  ;;  %p846_p6 = scmp.ge.s32.totalorder %s1299_s14, 1 }
  0x18   : > { %p1411_p7 = por %p193_p4, %p192_p3  ;;  %p221_p8 = scmp.lt.s32.totalorder %s1299_s14, 9 }
  0x19   : > { %s1615_s3 = sld [smem:[#allocation28_spill]]  ;;  %s1302_s23 = smov [#allocation8]  }
  0x1a   : > { %p1420_p10 = pnand %p846_p6, %p221_p8  ;;  %s237_s24 = sshll.u32 %s1302_s23, 4  ;;  %s238_s24 = int_to_ptr.vmem [resolvable:$true] %s237_s24 }
  0x1b   : > { %s1618_s5 = sld [smem:[#allocation30_spill]]  ;;  %s1303_s29 = smov 384  }
  0x1c   : > { %p890_p11 = pneg %p1420_p10  ;;  %s1304_s30 = smov 24  }
  0x1d   : > { %s1305_s16 = smov [#allocation11]   ;;  %s1619_s4 = sld [smem:[#allocation29_spill]] }
  0x1e   : > { %p1428_p12 = pnand %p890_p11, %p59_p0  ;;  %s266_s19 = sshll.u32 %s1305_s16, 4  ;;  %s267_s19 = int_to_ptr.vmem [resolvable:$true] %s266_s19 }
  0x1f   : > { %s235_s21 = sshll.u32 %s1615_s3, 4  ;;  %s1620_s6 = sld [smem:[#allocation31_spill]]  ;;  %s236_s21 = int_to_ptr.hbm [resolvable:$true] %s235_s21 }
  0x20   : > { %893 = dma.hbm_to_vmem [thread:$0]  (!%p1428_p12), %s236_s21, 6144, %s238_s24, [#allocation9], %s1303_s29, %s1303_s29, %s1304_s30  }
  0x21   : > { %s264_s28 = sshll.u32 %s1618_s5, 4  ;;  %s1306_s21 = smov [#allocation10]   ;;  %s265_s28 = int_to_ptr.hbm [resolvable:$true] %s264_s28 }
  0x22   : > { %899 = dma.hbm_to_vmem [thread:$0]  (!%p1428_p12), %s265_s28, 112, %s267_s19, [#allocation12]  }
  0x23   : > { %s249_s3 = sshll.u32 %s1619_s4, 4  ;;  %s251_s24 = sshll.u32 %s1306_s21, 4  ;;  %s250_s3 = int_to_ptr.hbm [resolvable:$true] %s249_s3  ;;  %s252_s24 = int_to_ptr.vmem [resolvable:$true] %s251_s24 }
  0x24   : > { %896 = dma.hbm_to_vmem [thread:$0]  (!%p1428_p12), %s250_s3, 6144, %s252_s24, [#allocation9], %s1303_s29, %s1303_s29, %s1304_s30  }
  0x25   : > { %s275_s5 = sshll.u32 %s1620_s6, 4  ;;  %s1307_s16 = smov [#allocation13]   ;;  %s276_s5 = int_to_ptr.hbm [resolvable:$true] %s275_s5 }
  0x26   : > { %s277_s20 = sshll.u32 %s1307_s16, 4  ;;  %s1308_s28 = smov 128   ;;  %s278_s20 = int_to_ptr.vmem [resolvable:$true] %s277_s20 }
  0x27   : > { %s1309_s19 = smov 8   ;;  %s1450_s23 = sadd.s32 1, %s1299_s14  }
  0x28   : > { %902 = dma.hbm_to_vmem [thread:$0]  (!%p1428_p12), %s276_s5, 2048, %s278_s20, [#allocation12], %s1308_s28, %s1308_s28, %s1309_s19  }
  0x29   : > { %s40_s26 = sld [smem:[#allocation4 + %s1299_s14]]  ;;  %s176_s27 = sadd.s32 1, %s1283_s11 }
  0x2a   : > { %s41_s21 = sld [smem:[#allocation4 + %s1450_s23]]  ;;  %p52_p13 = scmp.ne.s32.totalorder %s1295_s13, %s1291_s12 }
  0x2b   : > { %p53_p1 = scmp.eq.s32.totalorder %s1299_s14, 0  ;;  %p58_p3 = scmp.ne.s32.totalorder %s1291_s12, %s1287_s0 }
  0x2c   : > { %s173_s3 = ssub.s32 %s1299_s14, %s1450_s23  ;;  %s45_s29 = sadd.s32 1, %s1295_s13 }
  0x2d   : > { %p174_p4 = scmp.eq.s32.totalorder %s173_s3, 0  ;;  %p54_p6 = por %p53_p1, %p52_p13 }
  0x2e   : > { %p1465_p8 = por %p59_p0, %p58_p3  ;;  %p917_p11 = scmp.lt.s32.totalorder %s1299_s14, 8 }
  0x2f   : > { %s1470_s25 = scalar_select %p174_p4, %s1283_s11, %s176_s27  }
  0x30   : > { %s42_s30 = ssub.s32 %s40_s26, %s41_s21  ;;  %s291_s24 = sand.u32 1, %s1295_s13  }
  0x31   : > { %1622 = sst [smem:[#allocation26_spill]] %s1470_s25  ;;  %p43_p12 = scmp.eq.s32.totalorder %s42_s30, 0 }
  0x32   : > { %p1474_p2 = pnand %p917_p11, %p54_p6  ;;  %s294_s3 = scalar_lea.vmem [#allocation5], %s291_s24 }
  0x33   : > { %s1479_s0 = scalar_select %p43_p12, %s1295_s13, %s45_s29  }
  0x34   : > { %s872_s20 = scalar_select %p54_p6, [#allocation4], [#allocation17] }
  0x35   : > { %1624 = sst [smem:[#allocation27_spill]] %s1479_s0  ;;  %s302_s4 = sshll.u32 %s294_s3, 4  ;;  %s303_s4 = int_to_ptr.vmem [resolvable:$true] %s302_s4 }
  0x36   : > { %s873_s28 = scalar_select %p54_p6, %s1299_s14, 0 }
  0x37   : > { %s1639_s20 = smov (!%p917_p11, %s872_s20), [#allocation18]  ;;  %s292_s30 = scalar_lea.sflag [#allocation6], %s291_s24 }
  0x38   : > { %s1641_s28 = smov (!%p917_p11, %s873_s28), 0  ;;  %p1141_p1 = pneg %p1474_p2 }
  0x39   : > { %s295_s19 = sld [smem:[%s1639_s20 + %s1641_s28]]  ;;  %s1144_s28 = scalar_lea.hbm %s1598_s1, 64 }
  0x3f   : > { %s298_s26 = scalar_lea.hbm %s1598_s1, %s295_s19 }
  0x40   : > { %s300_s21 = sshll.u32 %s298_s26, 4  ;;  %s301_s21 = int_to_ptr.hbm [resolvable:$true] %s300_s21 }
  0x41   : > { %s1137_s25 = sshra.s32 %s301_s21, 4  ;;  %s1138_s25 = int_to_ptr.hbm [resolvable:$true] %s1137_s25 }
  0x42   : > { %s1139_s29 = scalar_lea.hbm %s1138_s25, 1  ;;  %p1145_p6 = scmp.lt.s32.totalorder %s1138_s25, %s1598_s1 }
  0x43   : > { %p1140_p13 = scmp.ne.s32.totalorder %s1138_s25, %s1139_s29  ;;  %p1146_p11 = scmp.lt.s32.totalorder %s1144_s28, %s1139_s29 }
  0x45   : > { %p1142_p3 = pnand %p1141_p1, %p1140_p13  ;;  %p1147_p12 = por %p1146_p11, %p1145_p6 }
  0x47   : > { %p1143_p4 = pneg %p1142_p3 }
  0x49   : > { %p1148_p9 = pnand %p1147_p12, %p1143_p4 }
  0x4b   : > { %1151 = shalt.err (!%p1148_p9)
}
  0x4c   : > { %908 = dma.hbm_to_vmem [thread:$0]  (!%p1474_p2), %s301_s21, 16, %s303_s4, %s292_s30  }
  0x4d   : > { %311 = sbr.rel (%p1420_p10) target bundleno = 721 (0x2d1), region = 44  ;;  %s313_s6 = sand.u32 (!%p1420_p10), 1, %s1291_s12  }
  0x4e   : > { %s314_s24 = scalar_lea.sflag (!%p1420_p10), [#allocation6], %s313_s6  ;;  %s1498_s0 = scalar_lea.vmem (!%p1420_p10), [#allocation5], %s313_s6 }
  0x52   : > { %1254 = dma.done.wait (%p1465_p8), %s314_s24, 16  }
  0x53   : > { %1256 = vsyncadd (%p1465_p8), %s314_s24, 4294967280 }
  0x54   : > { %1258 = dma.done.wait (%p59_p0), [#allocation9], 12288  }
  0x55   : > { %1260 = vsyncadd (%p59_p0), [#allocation9], 4294955008 }
  0x56   : > { %1262 = dma.done.wait (%p59_p0), [#allocation12], 2160  }
  0x57   : > { %1264 = vsyncadd (%p59_p0), [#allocation12], 4294965136  ;;  %s362_s4 = sand.u32 1, %s1279_s10   ;;  %p1625_p2 = scmp.ne.s32.totalorder %s1395_s15, 0 }
  0x58   : > { %s1515_s13 = scalar_lea.vmem [#allocation14], %s362_s4 }
  0x59   : > { %370 = sbr.rel (%p1625_p2) target bundleno = 96 (0x60), region = 68 }
  0x5e   : > { %v371_v0 = vld [vmem:[%s1599_s2] sm:$0x1] }
  0x5f   : > { %372 = vst [vmem:[#allocation2] sm:$0x1] %v371_v0 }
  0x60 PF: > { %v424_v1 = vld [vmem:[#allocation8 + $0x168] sm:$0xff]  ;;  %v421_v2 = vld [vmem:[#allocation8 + $0x150] sm:$0xff]  ;;  %v418_v5 = vld [vmem:[#allocation8 + $0x138] sm:$0xff]  ;;  %vm693_vm8 = vcmask 1040384   ;;  %s1310_s25 = smov [#allocation15]   ;;  %s733_s26 = sshll.u32 %s1605_s8, 4  ;;  %s734_s26 = int_to_ptr.hbm [resolvable:$true] %s733_s26 }
  0x61   : > { %v539_v3 = vld [vmem:[#allocation10 + $0x168] sm:$0xff]  ;;  %434 = vmatpush.msra.mxu0 %v424_v1  ;;  %v536_v4 = vld [vmem:[#allocation10 + $0x150] sm:$0xff]  ;;  %v533_v6 = vld [vmem:[#allocation10 + $0x138] sm:$0xff]  ;;  %s731_s16 = sshll.u32 %s1310_s25, 4  ;;  %p1626_p0 = scmp.eq.s32.totalorder %s1395_s15, 7  ;;  %s732_s16 = int_to_ptr.vmem [resolvable:$true] %s731_s16 }
  0x62   : > { %549 = vmatpush.msra.mxu3 %v539_v3  ;;  %v425_v7 = vld [vmem:[#allocation8 + $0x170] sm:$0xff]  ;;  %v422_v8 = vld [vmem:[#allocation8 + $0x158] sm:$0xff]  ;;  %v415_v9 = vld [vmem:[#allocation8 + $0x120] sm:$0xff]  ;;  %s717_s29 = scalar_lea.hbm %s1604_s7, %s1395_s15  ;;  %s719_s20 = sshll.u32 %s1515_s13, 4  ;;  %s720_s20 = int_to_ptr.vmem [resolvable:$true] %s719_s20 }
  0x63   : > { %435 = vmatpush.msra.mxu0 %v421_v2  ;;  %454 = vmatpush.msra.mxu1 %v425_v7  ;;  %v530_v10 = vld [vmem:[#allocation10 + $0x120] sm:$0xff]  ;;  %v412_v12 = vld [vmem:[#allocation8 + $0x108] sm:$0xff]  ;;  %v409_v15 = vld [vmem:[#allocation8 + $0xf0] sm:$0xff]  ;;  %s721_s28 = sshll.u32 %s717_s29, 4  ;;  %s709_s3 = scalar_lea.sflag [#allocation7], %s362_s4  ;;  %s722_s28 = int_to_ptr.hbm [resolvable:$true] %s721_s28 }
  0x64   : > { %550 = vmatpush.msra.mxu3 %v536_v4  ;;  %v419_v11 = vld [vmem:[#allocation8 + $0x140] sm:$0xff]  ;;  %v527_v13 = vld [vmem:[#allocation10 + $0x108] sm:$0xff]  ;;  %v524_v16 = vld [vmem:[#allocation10 + $0xf0] sm:$0xff]  ;;  %s1209_s6 = sshra.s32 %s722_s28, 4  ;;  %s1215_s5 = scalar_lea.hbm %s1604_s7, 8  ;;  %s1210_s6 = int_to_ptr.hbm [resolvable:$true] %s1209_s6 }
  0x65   : > { %436 = vmatpush.msra.mxu0 %v418_v5  ;;  %455 = vmatpush.msra.mxu1 %v422_v8  ;;  %v416_v14 = vld [vmem:[#allocation8 + $0x128] sm:$0xff]  ;;  %v413_v17 = vld [vmem:[#allocation8 + $0x110] sm:$0xff]  ;;  %v406_v18 = vld [vmem:[#allocation8 + $0xd8] sm:$0xff]  ;;  %s1211_s24 = scalar_lea.hbm %s1210_s6, 1  ;;  %p1216_p13 = scmp.lt.s32.totalorder %s1210_s6, %s1604_s7 }
  0x66   : > { %551 = vmatpush.msra.mxu3 %v533_v6  ;;  %v521_v19 = vld [vmem:[#allocation10 + $0xd8] sm:$0xff]  ;;  %v403_v21 = vld [vmem:[#allocation8 + $0xc0] sm:$0xff]  ;;  %v400_v24 = vld [vmem:[#allocation8 + $0xa8] sm:$0xff]  ;;  %p1212_p9 = scmp.ne.s32.totalorder %s1210_s6, %s1211_s24  ;;  %p1217_p1 = scmp.lt.s32.totalorder %s1215_s5, %s1211_s24 }
  0x67   : > { %437 = vmatpush.msra.mxu0 %v415_v9  ;;  %456 = vmatpush.msra.mxu1 %v419_v11  ;;  %v410_v20 = vld [vmem:[#allocation8 + $0xf8] sm:$0xff]  ;;  %v518_v22 = vld [vmem:[#allocation10 + $0xc0] sm:$0xff]  ;;  %v515_v25 = vld [vmem:[#allocation10 + $0xa8] sm:$0xff] }
  0x68   : > { %552 = vmatpush.msra.mxu3 %v530_v10  ;;  %v407_v23 = vld [vmem:[#allocation8 + $0xe0] sm:$0xff]  ;;  %v404_v26 = vld [vmem:[#allocation8 + $0xc8] sm:$0xff]  ;;  %v397_v27 = vld [vmem:[#allocation8 + $0x90] sm:$0xff]  ;;  %p1213_p10 = pnand %p1212_p9, %p1406_p5  ;;  %p1218_p3 = por %p1217_p1, %p1216_p13 }
  0x69   : > { %438 = vmatpush.msra.mxu0 %v412_v12  ;;  %457 = vmatpush.msra.mxu1 %v416_v14  ;;  %v512_v28 = vld [vmem:[#allocation10 + $0x90] sm:$0xff]  ;;  %v426_v29 = vld [vmem:[#allocation8 + $0x178] sm:$0xff]  ;;  %v423_v31 = vld [vmem:[#allocation8 + $0x160] sm:$0xff] }
  0x6a   : > { %553 = vmatpush.msra.mxu3 %v527_v13  ;;  %v401_v30 = vld [vmem:[#allocation8 + $0xb0] sm:$0xff]  ;;  %v394_v32 = vld [vmem:[#allocation8 + $0x78] sm:$0xff]  ;;  %474 = vmatpush.msra.mxu2 %v426_v29  ;;  %v420_v35 = vld [vmem:[#allocation8 + $0x148] sm:$0xff]  ;;  %p1214_p8 = pneg %p1213_p10 }
  0x6b   : > { %439 = vmatpush.msra.mxu0 %v409_v15  ;;  %458 = vmatpush.msra.mxu1 %v413_v17  ;;  %v509_v33 = vld [vmem:[#allocation10 + $0x78] sm:$0xff]  ;;  %v391_v36 = vld [vmem:[#allocation8 + $0x60] sm:$0xff]  ;;  %v417_v39 = vld [vmem:[#allocation8 + $0x130] sm:$0xff] }
  0x6c   : > { %554 = vmatpush.msra.mxu3 %v524_v16  ;;  %v398_v34 = vld [vmem:[#allocation8 + $0x98] sm:$0xff]  ;;  %v506_v37 = vld [vmem:[#allocation10 + $0x60] sm:$0xff]  ;;  %475 = vmatpush.msra.mxu2 %v423_v31  ;;  %v388_v40 = vld [vmem:[#allocation8 + $0x48] sm:$0xff]  ;;  %p1219_p4 = pnand %p1218_p3, %p1214_p8 }
  0x6d   : > { %440 = vmatpush.msra.mxu0 %v406_v18  ;;  %459 = vmatpush.msra.mxu1 %v410_v20  ;;  %v395_v38 = vld [vmem:[#allocation8 + $0x80] sm:$0xff]  ;;  %v503_v41 = vld [vmem:[#allocation10 + $0x48] sm:$0xff]  ;;  %v414_v43 = vld [vmem:[#allocation8 + $0x118] sm:$0xff] }
  0x6e   : > { %555 = vmatpush.msra.mxu3 %v521_v19  ;;  %476 = vmatpush.msra.mxu2 %v420_v35  ;;  %v392_v42 = vld [vmem:[#allocation8 + $0x68] sm:$0xff]  ;;  %v385_v44 = vld [vmem:[#allocation8 + $0x30] sm:$0xff]  ;;  %v411_v47 = vld [vmem:[#allocation8 + $0x100] sm:$0xff] }
  0x6f   : > { %441 = vmatpush.msra.mxu0 %v403_v21  ;;  %460 = vmatpush.msra.mxu1 %v407_v23  ;;  %v500_v45 = vld [vmem:[#allocation10 + $0x30] sm:$0xff]  ;;  %v382_v48 = vld [vmem:[#allocation8 + $0x18] sm:$0xff]  ;;  %v408_v52 = vld [vmem:[#allocation8 + $0xe8] sm:$0xff] }
  0x70   : > { %556 = vmatpush.msra.mxu3 %v518_v22  ;;  %477 = vmatpush.msra.mxu2 %v417_v39  ;;  %v389_v46 = vld [vmem:[#allocation8 + $0x50] sm:$0xff]  ;;  %v497_v49 = vld [vmem:[#allocation10 + $0x18] sm:$0xff]  ;;  %v379_v53 = vld [vmem:[#allocation8] sm:$0xff] }
  0x71   : > { %442 = vmatpush.msra.mxu0 %v400_v24  ;;  %461 = vmatpush.msra.mxu1 %v404_v26  ;;  %v373_v50 = vld [vmem:[%s1498_s0] sm:$0x1]  ;;  %v494_v54 = vld [vmem:[#allocation10] sm:$0xff]  ;;  %v540_v55 = vld [vmem:[#allocation10 + $0x170] sm:$0xff] }
  0x72   : > { %557 = vmatpush.msra.mxu3 %v515_v25  ;;  %478 = vmatpush.msra.mxu2 %v414_v43  ;;  %v386_v51 = vld [vmem:[#allocation8 + $0x38] sm:$0xff]  ;;  %v1525_v57 = vmax.f32 %v373_v50, 0.0  ;;  %v383_v58 = vld [vmem:[#allocation8 + $0x20] sm:$0xff]  ;;  %v405_v60 = vld [vmem:[#allocation8 + $0xd0] sm:$0xff] }
  0x73   : > { %443 = vmatpush.msra.mxu0 %v397_v27  ;;  %462 = vmatpush.msra.mxu1 %v401_v30  ;;  %v1523_v56 = vld [vmem:[#allocation2] sm:$0x1]  ;;  %v380_v61 = vld [vmem:[#allocation8 + $0x8] sm:$0xff]  ;;  %v534_v62 = vld [vmem:[#allocation10 + $0x140] sm:$0xff] }
  0x74   : > { %558 = vmatpush.msra.mxu3 %v512_v28  ;;  %479 = vmatpush.msra.mxu2 %v411_v47  ;;  %v537_v59 = vld [vmem:[#allocation10 + $0x158] sm:$0xff]  ;;  %v531_v1 = vld [vmem:[#allocation10 + $0x128] sm:$0xff]  ;;  %v538_v2 = vld [vmem:[#allocation10 + $0x160] sm:$0xff] }
  0x75   : > { %444 = vmatpush.msra.mxu0 %v394_v32  ;;  %463 = vmatpush.msra.mxu1 %v398_v34  ;;  %v541_v63 = vld [vmem:[#allocation10 + $0x178] sm:$0xff]  ;;  %v399_v3 = vld [vmem:[#allocation8 + $0xa0] sm:$0xff]  ;;  %v528_v4 = vld [vmem:[#allocation10 + $0x110] sm:$0xff] }
  0x76   : > { %559 = vmatpush.msra.mxu3 %v509_v33  ;;  %480 = vmatpush.msra.mxu2 %v408_v52  ;;  %v402_v0 = vld [vmem:[#allocation8 + $0xb8] sm:$0xff]  ;;  %v535_v5 = vld [vmem:[#allocation10 + $0x148] sm:$0xff]  ;;  %v532_v8 = vld [vmem:[#allocation10 + $0x130] sm:$0xff] }
  0x77   : > { %445 = vmatpush.msra.mxu0 %v391_v36  ;;  %464 = vmatpush.msra.mxu1 %v395_v38  ;;  %v396_v6 = vld [vmem:[#allocation8 + $0x88] sm:$0xff]  ;;  %v525_v7 = vld [vmem:[#allocation10 + $0xf8] sm:$0xff]  ;;  %v393_v9 = vld [vmem:[#allocation8 + $0x70] sm:$0xff] }
  0x78   : > { %560 = vmatpush.msra.mxu3 %v506_v37  ;;  %481 = vmatpush.msra.mxu2 %v405_v60  ;;  %v522_v10 = vld [vmem:[#allocation10 + $0xe0] sm:$0xff]  ;;  %v529_v11 = vld [vmem:[#allocation10 + $0x118] sm:$0xff]  ;;  %v519_v13 = vld [vmem:[#allocation10 + $0xc8] sm:$0xff] }
  0x79   : > { %446 = vmatpush.msra.mxu0 %v388_v40  ;;  %465 = vmatpush.msra.mxu1 %v392_v42  ;;  %v390_v12 = vld [vmem:[#allocation8 + $0x58] sm:$0xff]  ;;  %v526_v14 = vld [vmem:[#allocation10 + $0x100] sm:$0xff]  ;;  %v516_v16 = vld [vmem:[#allocation10 + $0xb0] sm:$0xff] }
  0x7a   : > { %561 = vmatpush.msra.mxu3 %v503_v41  ;;  %482 = vmatpush.msra.mxu2 %v402_v0  ;;  %v387_v15 = vld [vmem:[#allocation8 + $0x40] sm:$0xff]  ;;  %v523_v17 = vld [vmem:[#allocation10 + $0xe8] sm:$0xff]  ;;  %v513_v19 = vld [vmem:[#allocation10 + $0x98] sm:$0xff] }
  0x7b   : > { %447 = vmatpush.msra.mxu0 %v385_v44  ;;  %466 = vmatpush.msra.mxu1 %v389_v46  ;;  %v384_v18 = vld [vmem:[#allocation8 + $0x28] sm:$0xff]  ;;  %v520_v20 = vld [vmem:[#allocation10 + $0xd0] sm:$0xff]  ;;  %v510_v22 = vld [vmem:[#allocation10 + $0x80] sm:$0xff] }
  0x7c   : > { %562 = vmatpush.msra.mxu3 %v500_v45  ;;  %483 = vmatpush.msra.mxu2 %v399_v3  ;;  %v381_v21 = vld [vmem:[#allocation8 + $0x10] sm:$0xff]  ;;  %v517_v23 = vld [vmem:[#allocation10 + $0xb8] sm:$0xff]  ;;  %v507_v24 = vld [vmem:[#allocation10 + $0x68] sm:$0xff] }
  0x7d   : > { %448 = vmatpush.msra.mxu0 %v382_v48  ;;  %467 = vmatpush.msra.mxu1 %v386_v51  ;;  %v514_v25 = vld [vmem:[#allocation10 + $0xa0] sm:$0xff]  ;;  %v504_v26 = vld [vmem:[#allocation10 + $0x50] sm:$0xff]  ;;  %v511_v27 = vld [vmem:[#allocation10 + $0x88] sm:$0xff] }
  0x7e   : > { %563 = vmatpush.msra.mxu3 %v497_v49  ;;  %484 = vmatpush.msra.mxu2 %v396_v6  ;;  %v501_v28 = vld [vmem:[#allocation10 + $0x38] sm:$0xff]  ;;  %v508_v29 = vld [vmem:[#allocation10 + $0x70] sm:$0xff]  ;;  %v498_v30 = vld [vmem:[#allocation10 + $0x20] sm:$0xff] }
  0x7f   : > { %449 = vmatpush.msra.mxu0 %v379_v53  ;;  %468 = vmatpush.msra.mxu1 %v383_v58  ;;  %v505_v31 = vld [vmem:[#allocation10 + $0x58] sm:$0xff]  ;;  %v495_v32 = vld [vmem:[#allocation10 + $0x8] sm:$0xff]  ;;  %v502_v33 = vld [vmem:[#allocation10 + $0x40] sm:$0xff] }
  0x80   : > { %564 = vmatpush.msra.mxu3 %v494_v54  ;;  %450 = vmatmul.f32.vlgmr.msra.gmra.mxu0 %v1525_v57  ;;  %v499_v34 = vld [vmem:[#allocation10 + $0x28] sm:$0xff]  ;;  %v496_v35 = vld [vmem:[#allocation10 + $0x10] sm:$0xff]  ;;  %v1533_v36 = vld [vmem:[#allocation11] sm:$0x7] }
  0x81   : > { %569 = vmatpush.msrb.mxu0 %v540_v55  ;;  %565 = vmatmul.f32.vlgmr.msra.gmra.mxu3 %v1523_v56  ;;  %v1535_v37 = vld [vmem:[#allocation11 + $0x3] sm:$0x7]  ;;  %v428_v38 = vperm.slane %v1533_v36, 0  ;;  %v671_v45 = vld [vmem:[#allocation13 + $0x70] sm:$0xff]  ;;  %v670_v47 = vld [vmem:[#allocation13 + $0x68] sm:$0xff]  ;;  %v429_v60 = vperm.slane %v1533_v36, 1 }
  0x82   : > { %469 = vmatpush.msra.mxu1 %v380_v61  ;;  %485 = vmatpush.msra.mxu2 %v393_v9  ;;  %v543_v40 = vperm.slane %v1535_v37, 0  ;;  %v672_v43 = vld [vmem:[#allocation13 + $0x78] sm:$0xff]  ;;  %v669_v49 = vld [vmem:[#allocation13 + $0x60] sm:$0xff]  ;;  %v667_v51 = vld [vmem:[#allocation13 + $0x50] sm:$0xff]  ;;  %v544_v0 = vperm.slane %v1535_v37, 1 }
  0x83   : > { %570 = vmatpush.msrb.mxu0 %v537_v59  ;;  %470 = vmatmul.f32.vlgmr.msra.gmra.mxu1 %v1525_v57  ;;  %v668_v50 = vld [vmem:[#allocation13 + $0x58] sm:$0xff]  ;;  %v666_v52 = vld [vmem:[#allocation13 + $0x48] sm:$0xff]  ;;  %v665_v55 = vld [vmem:[#allocation13 + $0x40] sm:$0xff] }
  0x84   : > { %589 = vmatpush.msrb.mxu1 %v541_v63  ;;  %486 = vmatpush.msra.mxu2 %v390_v12  ;;  %v663_v58 = vld [vmem:[#allocation13 + $0x30] sm:$0xff]  ;;  %v662_v59 = vld [vmem:[#allocation13 + $0x28] sm:$0xff]  ;;  %v661_v61 = vld [vmem:[#allocation13 + $0x20] sm:$0xff] }
  0x85   : > { %571 = vmatpush.msrb.mxu0 %v534_v62 }
  0x86   : > { %590 = vmatpush.msrb.mxu1 %v538_v2  ;;  %487 = vmatpush.msra.mxu2 %v387_v15 }
  0x87   : > { %572 = vmatpush.msrb.mxu0 %v531_v1  ;;  %v660_v1 = vld [vmem:[#allocation13 + $0x18] sm:$0xff] }
  0x88   : > { %591 = vmatpush.msrb.mxu1 %v535_v5  ;;  %488 = vmatpush.msra.mxu2 %v384_v18 }
  0x89   : > { %573 = vmatpush.msrb.mxu0 %v528_v4  ;;  %v659_v4 = vld [vmem:[#allocation13 + $0x10] sm:$0xff] }
  0x8a   : > { %592 = vmatpush.msrb.mxu1 %v532_v8  ;;  %489 = vmatpush.msra.mxu2 %v381_v21 }
  0x8b   : > { %574 = vmatpush.msrb.mxu0 %v525_v7  ;;  %490 = vmatmul.f32.vlgmr.msra.gmra.mxu2 %v1525_v57  ;;  %v664_v57 = vld [vmem:[#allocation13 + $0x38] sm:$0xff]  ;;  %v658_v7 = vld [vmem:[#allocation13 + $0x8] sm:$0xff] }
  0x8c   : > { %593 = vmatpush.msrb.mxu1 %v529_v11  ;;  %673 = vmatpush.msrb.mxu2 %v672_v43 }
  0x8d   : > { %575 = vmatpush.msrb.mxu0 %v522_v10  ;;  %v657_v10 = vld [vmem:[#allocation13] sm:$0xff] }
  0x8e   : > { %594 = vmatpush.msrb.mxu1 %v526_v14  ;;  %674 = vmatpush.msrb.mxu2 %v671_v45 }
  0x8f   : > { %576 = vmatpush.msrb.mxu0 %v519_v13 }
  0x90   : > { %595 = vmatpush.msrb.mxu1 %v523_v17  ;;  %675 = vmatpush.msrb.mxu2 %v670_v47 }
  0x91   : > { %577 = vmatpush.msrb.mxu0 %v516_v16  ;;  %v545_v16 = vperm.slane %v1535_v37, 2 }
  0x92   : > { %596 = vmatpush.msrb.mxu1 %v520_v20  ;;  %676 = vmatpush.msrb.mxu2 %v669_v49 }
  0x93   : > { %578 = vmatpush.msrb.mxu0 %v513_v19 }
  0x94   : > { %597 = vmatpush.msrb.mxu1 %v517_v23  ;;  %677 = vmatpush.msrb.mxu2 %v668_v50  ;;  %v430_v23 = vperm.slane %v1533_v36, 2 }
  0x95   : > { %579 = vmatpush.msrb.mxu0 %v510_v22 }
  0x96   : > { %598 = vmatpush.msrb.mxu1 %v514_v25  ;;  %678 = vmatpush.msrb.mxu2 %v667_v51 }
  0x97   : > { %580 = vmatpush.msrb.mxu0 %v507_v24 }
  0x98   : > { %599 = vmatpush.msrb.mxu1 %v511_v27  ;;  %679 = vmatpush.msrb.mxu2 %v666_v52 }
  0x99   : > { %581 = vmatpush.msrb.mxu0 %v504_v26 }
  0x9a   : > { %600 = vmatpush.msrb.mxu1 %v508_v29  ;;  %680 = vmatpush.msrb.mxu2 %v665_v55 }
  0x9b   : > { %582 = vmatpush.msrb.mxu0 %v501_v28 }
  0x9c   : > { %601 = vmatpush.msrb.mxu1 %v505_v31  ;;  %681 = vmatpush.msrb.mxu2 %v664_v57 }
  0x9d   : > { %583 = vmatpush.msrb.mxu0 %v498_v30 }
  0x9e   : > { %602 = vmatpush.msrb.mxu1 %v502_v33  ;;  %682 = vmatpush.msrb.mxu2 %v663_v58 }
  0x9f   : > { %584 = vmatpush.msrb.mxu0 %v495_v32 }
  0xa0   : > { %585 = vmatmul.f32.vlgmr.msrb.gmra.mxu0 %v1523_v56  ;;  %603 = vmatpush.msrb.mxu1 %v499_v34 }
  0xa1   : > { %683 = vmatpush.msrb.mxu2 %v662_v59 }
  0xa2   : > { %604 = vmatpush.msrb.mxu1 %v496_v35 }
  0xa3   : > { %605 = vmatmul.f32.vlgmr.msrb.gmra.mxu1 %v1523_v56  ;;  %684 = vmatpush.msrb.mxu2 %v661_v61 }
  0xa5   : > { %685 = vmatpush.msrb.mxu2 %v660_v1 }
  0xa7   : > { %686 = vmatpush.msrb.mxu2 %v659_v4 }
  0xa9   : > { %687 = vmatpush.msrb.mxu2 %v658_v7 }
  0xab   : > { %688 = vmatpush.msrb.mxu2 %v657_v10 }
  0xfd   : > { %v451_v39 = vpop.f32.mrf.mxu0 }
  0xfe   : > { %v452_v41 = vadd.f32 %v451_v39, %v428_v38 }
 0x100   : > { %v471_v62 = vpop.f32.mrf.mxu1 }
 0x101   : > { %v472_v3 = vadd.f32 %v471_v62, %v429_v60 }
 0x104   : > { %v566_v42 = vpop.f32.mrf.mxu3 }
 0x105   : > { %v567_v44 = vadd.f32 %v566_v42, %v543_v40 }
 0x107   : > { %v609_v46 = vadd.f32 %v567_v44, %v452_v41  ;;  %v378_v44 = vld [vmem:[#allocation11 + $0x6] sm:$0x1] }
 0x109   : > { %v858_v48 = vmul.f32 -1.442695, %v609_v46 }
 0x10b   : > { %991 = vpow2.f32 %v858_v48 }
 0x10e   : > { %v491_v25 = vpop.f32.mrf.mxu2 }
 0x10f   : > { %v492_v27 = vadd.f32 %v491_v25, %v430_v23 }
 0x111   : > { %v992_v53 = vpop.eup %991 }
 0x112   : > { %v617_v54 = vadd.f32 1.0, %v992_v53 }
 0x114   : > { %993 = vrcp.f32 %v617_v54  ;;  %vm624_vm0 = vweird.f32 %v617_v54  ;;  %v630_v13 = vand.u32 2147483648, %v617_v54  ;;  %v628_v15 = vand.u32 2147483647, %v617_v54 }
 0x116   : > { %v631_v19 = vor.u32 1.1754944e-38, %v630_v13  ;;  %vm629_vm3 = vcmp.eq.f32.partialorder %v628_v15, 8.507059e+37 }
 0x11a   : > { %v994_v63 = vpop.eup %993 }
 0x11b   : > { %v620_v2 = vmul.f32 %v994_v63, %v617_v54  ;;  %vm625_vm1 = vweird.f32 %v994_v63 }
 0x11c   : > { %vm626_vm2 = vmor %vm624_vm0, %vm625_vm1 }
 0x11d   : > { %v586_v5 = vpop.f32.mrf.mxu0  ;;  %v621_v8 = vsub.f32 1.0, %v620_v2 }
 0x11e   : > { %v587_v6 = vadd.f32 %v586_v5, %v544_v0 }
 0x11f   : > { %v622_v12 = vmul.f32 %v994_v63, %v621_v8 }
 0x120   : > { %v610_v9 = vadd.f32 %v587_v6, %v472_v3  ;;  %v606_v18 = vpop.f32.mrf.mxu1 }
 0x121   : > { %v623_v14 = vadd.f32 %v994_v63, %v622_v12  ;;  %v607_v22 = vadd.f32 %v606_v18, %v545_v16 }
 0x122   : > { %v859_v11 = vmul.f32 -1.442695, %v610_v9 }
 0x123   : > { %v627_v21 = vsel %vm626_vm2, %v994_v63, %v623_v14 }
 0x124   : > { %995 = vpow2.f32 %v859_v11  ;;  %v632_v24 = vsel %vm629_vm3, %v631_v19, %v627_v21 }
 0x125   : > { %v649_v26 = vmul.f32 %v632_v24, %v607_v22 }
 0x127   : > { %v650_v30 = vadd.f32 %v649_v26, %v492_v27 }
 0x12a   : > { %v996_v17 = vpop.eup %995 }
 0x12b   : > { %v618_v20 = vadd.f32 1.0, %v996_v17 }
 0x12d   : > { %997 = vrcp.f32 %v618_v20  ;;  %v645_v32 = vand.u32 2147483648, %v618_v20  ;;  %v643_v34 = vand.u32 2147483647, %v618_v20  ;;  %vm639_vm5 = vweird.f32 %v618_v20 }
 0x12e   : > { %999 = vtanh.f32 %v650_v30 }
 0x12f   : > { %v646_v37 = vor.u32 1.1754944e-38, %v645_v32  ;;  %vm644_vm7 = vcmp.eq.f32.partialorder %v643_v34, 8.507059e+37 }
 0x133   : > { %v998_v28 = vpop.eup %997 }
 0x134   : > { %v635_v29 = vmul.f32 %v998_v28, %v618_v20  ;;  %vm640_vm4 = vweird.f32 %v998_v28  ;;  %v1000_v40 = vpop.eup %999 }
 0x135   : > { %vm641_vm6 = vmor %vm639_vm5, %vm640_vm4 }
 0x136   : > { %v636_v31 = vsub.f32 1.0, %v635_v29 }
 0x138   : > { %v637_v33 = vmul.f32 %v998_v28, %v636_v31 }
 0x13a   : > { %v638_v35 = vadd.f32 %v998_v28, %v637_v33 }
 0x13c   : > { %v642_v38 = vsel %vm641_vm6, %v998_v28, %v638_v35 }
 0x13d   : > { %v647_v36 = vsel %vm644_vm7, %v646_v37, %v642_v38 }
 0x13e   : > { %v652_v39 = vsub.f32 1.0, %v647_v36  ;;  %v654_v42 = vmul.f32 %v647_v36, %v1523_v56 }
 0x140   : > { %v653_v41 = vmul.f32 %v1000_v40, %v652_v39 }
 0x142   : > { %v655_v43 = vadd.f32 %v654_v42, %v653_v41 }
 0x144   : > { %656 = vst [vmem:[#allocation2] sm:$0x1] %v655_v43  ;;  %689 = vmatmul.f32.vlgmr.msrb.gmra.mxu2 %v655_v43 }
 0x145   : > { %707 = vst [vmem:[#allocation15] sm:$0x1] %v655_v43 }
 0x146   : > { %886 = dma.vmem_to_hbm [thread:$0]  (%p1626_p0), %s732_s16, 16, %s734_s26, [#allocation16]  }
 0x1c7   : > { %v690_v45 = vpop.f32.mrf.mxu2 }
 0x1c8   : > { %v691_v46 = vadd.f32 %v690_v45, %v378_v44 }
 0x1ca   : > { %v694_v47 = vsel %vm693_vm8, %v691_v46, -inf }
 0x1cb   : > { %695 = vmax.xlane.f32.xlu0 %v694_v47 }
 0x23e   : > { %v696_v48 = vpop.xlane.xlu0 %695 }
 0x23f   : > { %v697_v49 = vsub.f32 %v691_v46, %v696_v48 }
 0x241   : > { %v698_v50 = vmul.f32 1.442695, %v697_v49 }
 0x243   : > { %1001 = vpow2.f32 %v698_v50 }
 0x249   : > { %v1002_v51 = vpop.eup %1001 }
 0x24a   : > { %v700_v52 = vsel %vm693_vm8, %v1002_v51, 0.0 }
 0x24b   : > { %701 = vadd.xlane.f32.xlu0 %v700_v52 }
 0x2be   : > { %v702_v56 = vpop.xlane.xlu0 %701 }
 0x2bf   : > { %1003 = vlog2.f32 %v702_v56 }
 0x2c5   : > { %v1004_v53 = vpop.eup %1003 }
 0x2c6   : > { %v704_v54 = vmul.f32 0.6931472, %v1004_v53 }
 0x2c8   : > { %v705_v55 = vsub.f32 %v697_v49, %v704_v54 }
 0x2ca   : > { %706 = vst [vmem:[%s1515_s13] sm:$0x1] %v705_v55 }
 0x2cb   : > { %1222 = shalt.err (!%p1219_p4)
}
 0x2cc   : > { %884 = dma.vmem_to_hbm [thread:$0]  (%p1406_p5), %s720_s20, 16, %s722_s28, %s709_s3  }
 0x2cd   : > { %p1627_p6 = pmov %p1626_p0 }
 0x2ce   : > { %p1628_p11 = pmov %p1626_p0 }
 0x2cf   : > { %1266 = dma.done.wait (%p1627_p6), [#allocation16], 16  }
 0x2d0   : > { %1268 = vsyncadd (%p1628_p11), [#allocation16], 4294967280 }
 0x2d1 PF: > { %p924_p12 = scmp.ge.s32.totalorder %s1299_s14, 2  ;;  %s750_s4 = sand.u32 1, %s1275_s9  }
 0x2d2   : > { %s751_s13 = scalar_lea.sflag [#allocation7], %s750_s4 }
 0x2d3   : > { %p910_p2 = pnand %p924_p12, %p1411_p7 }
 0x2d5   : > { %p911_p0 = pneg %p910_p2 }
 0x2d7   : > { %1270 = dma.done.wait (%p911_p0), %s751_s13, 16  }
 0x2d8   : > { %1272 = vsyncadd (%p911_p0), %s751_s13, 4294967280  ;;  %s1629_s17 = sld [smem:[#allocation26_spill]]  ;;  %p33_p5 = scmp.ge.s32.totalorder %s1450_s23, 10  }
 0x2d9   : > { %s1630_s19 = sld [smem:[#allocation25_spill]]  ;;  %s1632_s9 = smov %s1279_s10 }
 0x2da   : > { %s1631_s13 = sld [smem:[#allocation27_spill]]  ;;  %s1633_s10 = smov %s1283_s11 }
 0x2db   : > { %s1635_s0 = smov %s1291_s12  ;;  %s1637_s14 = smov %s1450_s23 }
 0x2dc   :  { %35 = sbr.rel (!%p33_p5) target bundleno = 19 (0x13), region = 117 }
 0x2de   : > { %s1634_s11 = smov %s1629_s17 }
 0x2df   : > { %s1636_s12 = smov %s1630_s19 }
 0x2e1   :  { %756 = vsyncpa [#allocation6], 1 }
 0x2e2   :  { %758 = vsyncpa [#allocation6 + $0x1], 1 }
 0x2e3   :  { %759 = vsyncpa [#allocation9], 1 }
 0x2e4   :  { %760 = vsyncpa [#allocation12], 1 }
 0x2e5   :  { %761 = vsyncpa [#allocation7], 1 }
 0x2e6   :  { %763 = vsyncpa [#allocation7 + $0x1], 1 }
 0x2e7   :  { %764 = vsyncpa [#allocation16], 1 }

</bundles_post_ra>
